<compile_context>
chip_gen: v5e
topology: v5e:2x2
jax: 0.10.0
libtpu: 0.0.40
codegen_flags: <defaults>
</compile_context>

<pallas_src>
import jax
import jax.numpy as jnp
from jax.experimental import pallas as pl
from jax.experimental.pallas import tpu as pltpu

_LANES = 128            # padded weight width (clean, full-width MXU pass)
_ROW_TILE = 2048        # rows per grid step (f32 tile = 14 MiB @ D=1792)
_VMEM_LIMIT = 48 << 20  # raise default scoped VMEM; fits all of v5e/v6e/v7x


def _round_up(v, m):
    return ((v + m - 1) // m) * m


def _converter_kernel(x_ref, w_ref, b_ref, o_ref):
    # x_ref: (TN, D) f32 | w_ref: (D, 128) bf16 | b_ref: (1, B) f32
    # o_ref: (TN, B) f32
    bo = o_ref.shape[-1]
    # In-kernel f32 -> bf16 cast (hidden under the x DMA), then one fused
    # layer1+layer2 matmul on the MXU with f32 accumulation.
    x_bf = x_ref[...].astype(jnp.bfloat16)
    z = jnp.dot(x_bf, w_ref[...], preferred_element_type=jnp.float32)
    # Bias add + sigmoid in f32 on the narrow (real) output columns only;
    # padded weight columns are never read back.  Dropout -> identity (eval).
    o_ref[...] = jax.nn.sigmoid(z[:, :bo] + b_ref[...])


def prepare_converter_params(w1, b1, w2, b2):
    """One-time preprocessing of the torch-layout parameters.

    w1: (64, D), b1: (64,), w2: (B, 64), b2: (B,)
      -> (W_eff zero-padded to (D, 128) bf16,  b_eff as (1, B) f32)
    """
    w1 = jnp.asarray(w1, jnp.float32)
    b1 = jnp.asarray(b1, jnp.float32)
    w2 = jnp.asarray(w2, jnp.float32)
    b2 = jnp.asarray(b2, jnp.float32)

    b_out = w2.shape[0]
    # Exact fusion: no nonlinearity between layer1 and layer2.
    w_eff = w1.T @ w2.T                       # (D, B)
    b_eff = b1 @ w2.T + b2                    # (B,)

    d = w_eff.shape[0]
    w_pad = jnp.zeros((d, _LANES), jnp.float32).at[:, :b_out].set(w_eff)
    # bf16 matmul operand (f32 accumulation in-kernel); resident, ~448 KiB.
    return w_pad.astype(jnp.bfloat16), b_eff.reshape(1, b_out)


@jax.jit
def dense_converter_forward(joint_embedding, w_pad, b_pad):
    """joint_embedding: (N, D) -> (N, B) probabilities (eval-mode forward)."""
    x = jnp.asarray(joint_embedding, jnp.float32)
    n, d = x.shape
    b_out = b_pad.shape[-1]

    # Row tile: whole array if it fits one tile (any N is then legal since
    # block dim == full array dim); otherwise a multiple-of-8 tile with the
    # boundary block handled by Pallas (no eager padding of x).
    tn = n if n <= _ROW_TILE else _ROW_TILE
    grid = (pl.cdiv(n, tn),)

    return pl.pallas_call(
        _converter_kernel,
        out_shape=jax.ShapeDtypeStruct((n, b_out), jnp.float32),
        grid_spec=pltpu.PrefetchScalarGridSpec(
            num_scalar_prefetch=0,
            grid=grid,
            in_specs=[
                pl.BlockSpec((tn, d), lambda i: (i, 0)),        # x row tiles
                pl.BlockSpec((d, _LANES), lambda i: (0, 0)),    # resident W
                pl.BlockSpec((1, b_out), lambda i: (0, 0)),     # resident b
            ],
            out_specs=pl.BlockSpec((tn, b_out), lambda i: (i, 0)),
        ),
        compiler_params=pltpu.CompilerParams(
            dimension_semantics=("parallel",),
            vmem_limit_bytes=_VMEM_LIMIT),
        cost_estimate=pl.CostEstimate(
            flops=2 * n * d * _LANES,
            transcendentals=n * b_out,
            bytes_accessed=(x.size * 4 + w_pad.size * 2 + b_pad.size * 4
                            + n * b_out * 4)),
    )(x, w_pad, b_pad)


if __name__ == "__main__":
    batch_size = 2                                        # module's `batch_size`
    in_features = 768 * batch_size + batch_size * 128     # 1792
    hidden = 64
    n_rows = 4                                            # number of embeddings

    key = jax.random.PRNGKey(0)
    kx, k1, k2, k3, k4, kx2 = jax.random.split(key, 6)

    # torch-style uniform(-1/sqrt(fan_in), 1/sqrt(fan_in)) init.
    bound1 = 1.0 / (in_features ** 0.5)
    bound2 = 1.0 / (hidden ** 0.5)
    w1 = jax.random.uniform(k1, (hidden, in_features), jnp.float32,
                            -bound1, bound1)
    b1 = jax.random.uniform(k2, (hidden,), jnp.float32, -bound1, bound1)
    w2 = jax.random.uniform(k3, (batch_size, hidden), jnp.float32,
                            -bound2, bound2)
    b2 = jax.random.uniform(k4, (batch_size,), jnp.float32, -bound2, bound2)

    # One-time weight preprocessing (fuse + pad + bf16).
    w_pad, b_pad = prepare_converter_params(w1, b1, w2, b2)

    def ref_forward(xx):
        # Reference in plain f32 JAX (eval-mode dropout == identity).
        return jax.nn.sigmoid((xx @ w1.T + b1) @ w2.T + b2)

    # Main small case.
    x = jax.random.normal(kx, (n_rows, in_features), jnp.float32)
    out = jax.block_until_ready(dense_converter_forward(x, w_pad, b_pad))
    ref = ref_forward(x)
    assert out.shape == (n_rows, batch_size)
    assert jnp.allclose(out, ref, atol=2e-2, rtol=0), (
        float(jnp.max(jnp.abs(out - ref))))

    # Odd row count (not a multiple of 8) -- exercises block == full-array-dim
    # sizing without any eager padding of x.
    x2 = jax.random.normal(kx2, (37, in_features), jnp.float32)
    out2 = jax.block_until_ready(dense_converter_forward(x2, w_pad, b_pad))
    ref2 = ref_forward(x2)
    assert out2.shape == (37, batch_size)
    assert jnp.allclose(out2, ref2, atol=2e-2, rtol=0), (
        float(jnp.max(jnp.abs(out2 - ref2))))

    print("KERNEL_OK")
</pallas_src>

<mosaic_0001>
module attributes {stable_mosaic.version = 11 : i64} {
  func.func @_converter_kernel(%arg0: i32, %arg1: memref<4x1792xf32, #tpu.memory_space<vmem>>, %arg2: memref<1792x128xbf16, #tpu.memory_space<vmem>>, %arg3: memref<1x2xf32, #tpu.memory_space<vmem>>, %arg4: memref<4x2xf32, #tpu.memory_space<vmem>>) attributes {dimension_semantics = [#tpu.dimension_semantics<parallel>], iteration_bounds = array<i64: 1>, scalar_prefetch = 0 : i64, scratch_operands = 0 : i64, tpu.core_type = #tpu.core_type<tc>, window_params = [{transform_indices = @transform_0, window_bounds = array<i64: 4, 1792>}, {pipeline_mode = #tpu.pipeline_mode<synchronous>, transform_indices = @transform_1, window_bounds = array<i64: 1792, 128>}, {pipeline_mode = #tpu.pipeline_mode<synchronous>, transform_indices = @transform_2, window_bounds = array<i64: 1, 2>}, {transform_indices = @transform_3, window_bounds = array<i64: 4, 2>}]} {
    %c0 = arith.constant 0 : index
    %c0_0 = arith.constant 0 : index
    %0 = vector.load %arg1[%c0, %c0_0] : memref<4x1792xf32, #tpu.memory_space<vmem>>, vector<4x1792xf32>
    %1 = arith.truncf %0 : vector<4x1792xf32> to vector<4x1792xbf16>
    %c0_1 = arith.constant 0 : index
    %c0_2 = arith.constant 0 : index
    %2 = vector.load %arg2[%c0_1, %c0_2] : memref<1792x128xbf16, #tpu.memory_space<vmem>>, vector<1792x128xbf16>
    %cst = arith.constant dense<0.000000e+00> : vector<4x128xf32>
    %3 = tpu.matmul %1, %2, %cst {dimension_numbers = #tpu.dot_dimension_numbers<[1], [0], [0], [1], [0, 0, 1, 1], [], []>} : vector<4x1792xbf16>, vector<1792x128xbf16>, vector<4x128xf32> -> vector<4x128xf32>
    %4 = vector.extract_strided_slice %3 {offsets = [0, 0], sizes = [4, 2], strides = [1, 1]} : vector<4x128xf32> to vector<4x2xf32>
    %c0_3 = arith.constant 0 : index
    %c0_4 = arith.constant 0 : index
    %5 = vector.load %arg3[%c0_3, %c0_4] : memref<1x2xf32, #tpu.memory_space<vmem>>, vector<1x2xf32>
    %6 = vector.broadcast %5 : vector<1x2xf32> to vector<4x2xf32>
    %7 = arith.addf %4, %6 : vector<4x2xf32>
    %8 = arith.negf %7 : vector<4x2xf32>
    %9 = math.exp %8 : vector<4x2xf32>
    %cst_5 = arith.constant 1.000000e+00 : f32
    %10 = vector.broadcast %cst_5 : f32 to vector<4x2xf32>
    %11 = arith.addf %10, %9 : vector<4x2xf32>
    %12 = arith.divf %10, %11 : vector<4x2xf32>
    %c0_6 = arith.constant 0 : index
    %c0_7 = arith.constant 0 : index
    %13 = vector.load %arg4[%c0_6, %c0_7] : memref<4x2xf32, #tpu.memory_space<vmem>>, vector<4x2xf32>
    tpu.vector_store %arg4[%c0_6, %c0_7], %12 {strides = array<i32>} : memref<4x2xf32, #tpu.memory_space<vmem>>, vector<4x2xf32>,
    return
  }
  func.func @transform_0(%arg0: i32) -> (i32, i32) {
    %c0_i32 = arith.constant 0 : i32
    %c0_i32_0 = arith.constant 0 : i32
    return %arg0, %c0_i32 : i32, i32
  }
  func.func @transform_1(%arg0: i32) -> (i32, i32) {
    %c0_i32 = arith.constant 0 : i32
    %c0_i32_0 = arith.constant 0 : i32
    %c0_i32_1 = arith.constant 0 : i32
    return %c0_i32, %c0_i32_0 : i32, i32
  }
  func.func @transform_2(%arg0: i32) -> (i32, i32) {
    %c0_i32 = arith.constant 0 : i32
    %c0_i32_0 = arith.constant 0 : i32
    %c0_i32_1 = arith.constant 0 : i32
    return %c0_i32, %c0_i32_0 : i32, i32
  }
  func.func @transform_3(%arg0: i32) -> (i32, i32) {
    %c0_i32 = arith.constant 0 : i32
    %c0_i32_0 = arith.constant 0 : i32
    return %arg0, %c0_i32 : i32, i32
  }
}

</mosaic_0001>

<bundles_post_ra>
// kernel: dense_converter_forward.1
= control target key start
LH: loop header
LB: loop body
LE: loop exit
PB: predicated region body
PF: predicated region fallthrough
CT: control target
= control target key end

     0   :  { %8 = vsyncpa [#allocation3], 0  ;;  %s1886_s0 = inlined_call_operand.hbm [shape: f32[4,1792], index: 0, kind: input, shape index: {}]   ;;  %s1887_s1 = inlined_call_operand.hbm [shape: bf16[1792,128], index: 1, kind: input, shape index: {}]   ;;  %s1888_s2 = inlined_call_operand.vmem [shape: f32[1,2], index: 2, kind: input, shape index: {}]   ;;  %s1889_s3 = inlined_call_operand.vmem [shape: f32[4,2], index: 3, kind: output, shape index: {}]  }
   0x1   :  { %s15_s14 = sshll.u32 %s1886_s0, 4  ;;  %s16_s14 = int_to_ptr.hbm [resolvable:$true] %s15_s14 }
   0x2   :  { %9 = vsyncpa [#allocation5], 0  ;;  %s1842_s15 = smov [#allocation2]   ;;  %s25_s19 = sshll.u32 %s1887_s1, 4  ;;  %s26_s19 = int_to_ptr.hbm [resolvable:$true] %s25_s19 }
   0x3   :  { %s17_s16 = sshll.u32 %s1842_s15, 4  ;;  %s1843_s20 = smov [#allocation4]   ;;  %s18_s16 = int_to_ptr.vmem [resolvable:$true] %s17_s16 }
   0x4   :  { %20 = dma.hbm_to_vmem [thread:$0]  %s16_s14, 896, %s18_s16, [#allocation3]  }
   0x5   :  { %s27_s21 = sshll.u32 %s1843_s20, 4  ;;  %s1844_s22 = smov 64   ;;  %s28_s21 = int_to_ptr.vmem [resolvable:$true] %s27_s21 }
   0x6   :  { %s1845_s23 = smov 4  }
   0x7   :  { %33 = dma.hbm_to_vmem [thread:$0]  %s26_s19, 14336, %s28_s21, [#allocation5], %s1844_s22, %s1844_s22, %s1845_s23  }
   0x8   :  { %1838 = dma.done.wait [#allocation3], 896  }
   0x9   :  { %1839 = vsyncadd [#allocation3], 4294966400 }
   0xa   :  { %1840 = dma.done.wait [#allocation5], 14336  }
   0xb   :  { %1841 = vsyncadd [#allocation5], 4294952960  ;;  %v1676_v0 = vld [vmem:[#allocation4 + $0x38] sm:$0xff]  ;;  %v1675_v4 = vld [vmem:[#allocation4 + $0x30] sm:$0xff]  ;;  %vm1212_vm3 = vcmask 11264  }
   0xc   :  { %v1684_v1 = vld [vmem:[#allocation4 + $0x78] sm:$0xff]  ;;  %1006 = vmatpush.bf16.msra.mxu0 %v1676_v0  ;;  %v1683_v5 = vld [vmem:[#allocation4 + $0x70] sm:$0xff]  ;;  %v1674_v8 = vld [vmem:[#allocation4 + $0x28] sm:$0xff] }
   0xd   :  { %v1692_v2 = vld [vmem:[#allocation4 + $0xb8] sm:$0xff]  ;;  %1019 = vmatpush.bf16.msra.mxu1 %v1684_v1  ;;  %v1691_v6 = vld [vmem:[#allocation4 + $0xb0] sm:$0xff]  ;;  %v1682_v9 = vld [vmem:[#allocation4 + $0x68] sm:$0xff] }
   0xe   :  { %v1700_v3 = vld [vmem:[#allocation4 + $0xf8] sm:$0xff]  ;;  %1032 = vmatpush.bf16.msra.mxu2 %v1692_v2  ;;  %v1699_v7 = vld [vmem:[#allocation4 + $0xf0] sm:$0xff]  ;;  %v1690_v10 = vld [vmem:[#allocation4 + $0xa8] sm:$0xff] }
   0xf   :  { %1045 = vmatpush.bf16.msra.mxu3 %v1700_v3  ;;  %v1698_v11 = vld [vmem:[#allocation4 + $0xe8] sm:$0xff]  ;;  %v1673_v12 = vld [vmem:[#allocation4 + $0x20] sm:$0xff]  ;;  %v1672_v16 = vld [vmem:[#allocation4 + $0x18] sm:$0xff] }
  0x10   :  { %1007 = vmatpush.bf16.msra.mxu0 %v1675_v4  ;;  %v1681_v13 = vld [vmem:[#allocation4 + $0x60] sm:$0xff]  ;;  %v1680_v17 = vld [vmem:[#allocation4 + $0x58] sm:$0xff]  ;;  %v45_v20 = vld [vmem:[#allocation2 + $0x8] sm:$0xff] }
  0x11   :  { %1020 = vmatpush.bf16.msra.mxu1 %v1683_v5  ;;  %v1689_v14 = vld [vmem:[#allocation4 + $0xa0] sm:$0xff]  ;;  %v1688_v18 = vld [vmem:[#allocation4 + $0x98] sm:$0xff]  ;;  %v44_v21 = vld [vmem:[#allocation2] sm:$0xff]  ;;  %60 = vst [vmem:[#allocation1 + $0x10] ss:$2 sm:$0xff] %v45_v20 }
  0x12   :  { %1033 = vmatpush.bf16.msra.mxu2 %v1691_v6  ;;  %v1697_v15 = vld [vmem:[#allocation4 + $0xe0] sm:$0xff]  ;;  %v1696_v19 = vld [vmem:[#allocation4 + $0xd8] sm:$0xff]  ;;  %v1671_v22 = vld [vmem:[#allocation4 + $0x10] sm:$0xff]  ;;  %58 = vst [vmem:[#allocation1] ss:$2 sm:$0xff] %v44_v21 }
  0x13   :  { %1046 = vmatpush.bf16.msra.mxu3 %v1699_v7  ;;  %v1679_v23 = vld [vmem:[#allocation4 + $0x50] sm:$0xff]  ;;  %v1670_v26 = vld [vmem:[#allocation4 + $0x8] sm:$0xff]  ;;  %v47_v31 = vld [vmem:[#allocation2 + $0x18] sm:$0xff] }
  0x14   :  { %1008 = vmatpush.bf16.msra.mxu0 %v1674_v8  ;;  %v1687_v24 = vld [vmem:[#allocation4 + $0x90] sm:$0xff]  ;;  %v1678_v27 = vld [vmem:[#allocation4 + $0x48] sm:$0xff]  ;;  %v1669_v32 = vld [vmem:[#allocation4] sm:$0xff]  ;;  %64 = vst [vmem:[#allocation1 + $0x30] ss:$2 sm:$0xff] %v47_v31 }
  0x15   :  { %1021 = vmatpush.bf16.msra.mxu1 %v1682_v9  ;;  %v1695_v25 = vld [vmem:[#allocation4 + $0xd0] sm:$0xff]  ;;  %v1686_v28 = vld [vmem:[#allocation4 + $0x88] sm:$0xff]  ;;  %v1677_v36 = vld [vmem:[#allocation4 + $0x40] sm:$0xff] }
  0x16   :  { %1034 = vmatpush.bf16.msra.mxu2 %v1690_v10  ;;  %v1694_v29 = vld [vmem:[#allocation4 + $0xc8] sm:$0xff]  ;;  %v49_v30 = vld [vmem:[#allocation2 + $0x28] sm:$0xff]  ;;  %v1685_v38 = vld [vmem:[#allocation4 + $0x80] sm:$0xff] }
  0x17   :  { %1047 = vmatpush.bf16.msra.mxu3 %v1698_v11  ;;  %v48_v33 = vld [vmem:[#allocation2 + $0x20] sm:$0xff]  ;;  %v1708_v39 = vld [vmem:[#allocation4 + $0x138] sm:$0xff]  ;;  %v1693_v43 = vld [vmem:[#allocation4 + $0xc0] sm:$0xff] }
  0x18   :  { %1009 = vmatpush.bf16.msra.mxu0 %v1673_v12  ;;  %v67_v34 = vld.sshfl [vmem:[#allocation1 + $0x10] sm:$0xff pattern:$0x75316420]  ;;  %v68_v35 = vld.sshfl [vmem:[#allocation1 + $0x18] sm:$0xff pattern:$0x75316420] }
  0x19   :  { %1022 = vmatpush.bf16.msra.mxu1 %v1681_v13  ;;  %v65_v37 = vld.sshfl [vmem:[#allocation1] sm:$0xff pattern:$0x75316420]  ;;  %74 = vst [vmem:[#allocation1 + $0x10] ss:$2 sm:$0xff] %v49_v30  ;;  %v1716_v41 = vld [vmem:[#allocation4 + $0x178] sm:$0xff]  ;;  %v98_v47 = vpack.c.bf16 %v67_v34, %v67_v34  ;;  %v99_v52 = vpack.c.bf16 %v68_v35, %v68_v35 }
  0x1a   :  { %1035 = vmatpush.bf16.msra.mxu2 %v1689_v14  ;;  %v66_v40 = vld.sshfl [vmem:[#allocation1 + $0x8] sm:$0xff pattern:$0x75316420]  ;;  %v1724_v42 = vld [vmem:[#allocation4 + $0x1b8] sm:$0xff]  ;;  %v96_v44 = vpack.c.bf16 %v65_v37, %v65_v37  ;;  %v1707_v48 = vld [vmem:[#allocation4 + $0x130] sm:$0xff] }
  0x1b   :  { %1048 = vmatpush.bf16.msra.mxu3 %v1697_v15  ;;  %73 = vst [vmem:[#allocation1] ss:$2 sm:$0xff] %v48_v33  ;;  %v46_v45 = vld [vmem:[#allocation2 + $0x10] sm:$0xff]  ;;  %v97_v49 = vpack.c.bf16 %v66_v40, %v66_v40  ;;  %v1715_v50 = vld [vmem:[#allocation4 + $0x170] sm:$0xff]  ;;  %v1706_v54 = vld [vmem:[#allocation4 + $0x128] sm:$0xff] }
  0x1c   :  { %1010 = vmatpush.bf16.msra.mxu0 %v1672_v16  ;;  %v1732_v46 = vld [vmem:[#allocation4 + $0x1f8] sm:$0xff]  ;;  %62 = vst [vmem:[#allocation1 + $0x20] ss:$2 sm:$0xff] %v46_v45  ;;  %v1723_v51 = vld [vmem:[#allocation4 + $0x1b0] sm:$0xff]  ;;  %v1714_v56 = vld [vmem:[#allocation4 + $0x168] sm:$0xff] }
  0x1d   :  { %1023 = vmatpush.bf16.msra.mxu1 %v1680_v17  ;;  %v1731_v53 = vld [vmem:[#allocation4 + $0x1f0] sm:$0xff]  ;;  %v50_v55 = vld [vmem:[#allocation2 + $0x30] sm:$0xff]  ;;  %v1722_v57 = vld [vmem:[#allocation4 + $0x1a8] sm:$0xff] }
  0x1e   :  { %1036 = vmatpush.bf16.msra.mxu2 %v1688_v18  ;;  %v1730_v60 = vld [vmem:[#allocation4 + $0x1e8] sm:$0xff]  ;;  %v1705_v61 = vld [vmem:[#allocation4 + $0x120] sm:$0xff]  ;;  %v1704_v1 = vld [vmem:[#allocation4 + $0x118] sm:$0xff] }
  0x1f   :  { %1049 = vmatpush.bf16.msra.mxu3 %v1696_v19  ;;  %v1713_v62 = vld [vmem:[#allocation4 + $0x160] sm:$0xff]  ;;  %v1712_v2 = vld [vmem:[#allocation4 + $0x158] sm:$0xff]  ;;  %v1703_v5 = vld [vmem:[#allocation4 + $0x110] sm:$0xff] }
  0x20   :  { %1011 = vmatpush.bf16.msra.mxu0 %v1671_v22  ;;  %v1721_v63 = vld [vmem:[#allocation4 + $0x1a0] sm:$0xff]  ;;  %v1720_v3 = vld [vmem:[#allocation4 + $0x198] sm:$0xff]  ;;  %v1711_v6 = vld [vmem:[#allocation4 + $0x150] sm:$0xff] }
  0x21   :  { %1024 = vmatpush.bf16.msra.mxu1 %v1679_v23  ;;  %v1729_v0 = vld [vmem:[#allocation4 + $0x1e0] sm:$0xff]  ;;  %v1728_v4 = vld [vmem:[#allocation4 + $0x1d8] sm:$0xff]  ;;  %v1719_v7 = vld [vmem:[#allocation4 + $0x190] sm:$0xff] }
  0x22   :  { %1037 = vmatpush.bf16.msra.mxu2 %v1687_v24  ;;  %v1727_v8 = vld [vmem:[#allocation4 + $0x1d0] sm:$0xff]  ;;  %v1702_v9 = vld [vmem:[#allocation4 + $0x108] sm:$0xff]  ;;  %v1701_v13 = vld [vmem:[#allocation4 + $0x100] sm:$0xff] }
  0x23   :  { %1050 = vmatpush.bf16.msra.mxu3 %v1695_v25  ;;  %v1872_v58 = vld.sshfl [vmem:[#allocation1 + $0x20] sm:$0xff pattern:$0x75316420]  ;;  %v1874_v59 = vld.sshfl [vmem:[#allocation1 + $0x28] sm:$0xff pattern:$0x75316420] }
  0x24   :  { %1012 = vmatpush.bf16.msra.mxu0 %v1670_v26  ;;  %75 = vst [vmem:[#allocation1 + $0x20] ss:$2 sm:$0xff] %v50_v55  ;;  %v1710_v10 = vld [vmem:[#allocation4 + $0x148] sm:$0xff]  ;;  %v1709_v14 = vld [vmem:[#allocation4 + $0x140] sm:$0xff]  ;;  %v1740_v17 = vld [vmem:[#allocation4 + $0x238] sm:$0xff]  ;;  %v100_v24 = vpack.c.bf16 %v1872_v58, %v1872_v58  ;;  %v101_v25 = vpack.c.bf16 %v1874_v59, %v1874_v59 }
  0x25   :  { %1025 = vmatpush.bf16.msra.mxu1 %v1678_v27  ;;  %v1718_v11 = vld [vmem:[#allocation4 + $0x188] sm:$0xff]  ;;  %v1717_v15 = vld [vmem:[#allocation4 + $0x180] sm:$0xff]  ;;  %v71_v16 = vld.sshfl [vmem:[#allocation1 + $0x30] sm:$0xff pattern:$0x75316420] }
  0x26   :  { %1038 = vmatpush.bf16.msra.mxu2 %v1686_v28  ;;  %v1726_v12 = vld [vmem:[#allocation4 + $0x1c8] sm:$0xff]  ;;  %v1748_v18 = vld [vmem:[#allocation4 + $0x278] sm:$0xff]  ;;  %v1725_v20 = vld [vmem:[#allocation4 + $0x1c0] sm:$0xff]  ;;  %v102_v22 = vpack.c.bf16 %v71_v16, %v71_v16 }
  0x27   :  { %1051 = vmatpush.bf16.msra.mxu3 %v1694_v29  ;;  %v1756_v19 = vld [vmem:[#allocation4 + $0x2b8] sm:$0xff]  ;;  %v1739_v26 = vld [vmem:[#allocation4 + $0x230] sm:$0xff]  ;;  %v1738_v31 = vld [vmem:[#allocation4 + $0x228] sm:$0xff] }
  0x28   :  { %1013 = vmatpush.bf16.msra.mxu0 %v1669_v32  ;;  %v1764_v21 = vld [vmem:[#allocation4 + $0x2f8] sm:$0xff]  ;;  %v1747_v27 = vld [vmem:[#allocation4 + $0x270] sm:$0xff]  ;;  %v1746_v32 = vld [vmem:[#allocation4 + $0x268] sm:$0xff] }
  0x29   :  { %1026 = vmatpush.bf16.msra.mxu1 %v1677_v36  ;;  %v72_v23 = vld.sshfl [vmem:[#allocation1 + $0x38] sm:$0xff pattern:$0x75316420]  ;;  %v1755_v28 = vld [vmem:[#allocation4 + $0x2b0] sm:$0xff]  ;;  %v1754_v33 = vld [vmem:[#allocation4 + $0x2a8] sm:$0xff] }
  0x2a   :  { %1039 = vmatpush.bf16.msra.mxu2 %v1685_v38  ;;  %v103_v29 = vpack.c.bf16 %v72_v23, %v72_v23  ;;  %v1763_v30 = vld [vmem:[#allocation4 + $0x2f0] sm:$0xff]  ;;  %v1762_v34 = vld [vmem:[#allocation4 + $0x2e8] sm:$0xff]  ;;  %v1737_v35 = vld [vmem:[#allocation4 + $0x220] sm:$0xff] }
  0x2b   :  { %1052 = vmatpush.bf16.msra.mxu3 %v1693_v43  ;;  %1014 = vmatmul.bf16.vlgmr.msra.gmra.mxu0 %v96_v44  ;;  %v1745_v36 = vld [vmem:[#allocation4 + $0x260] sm:$0xff]  ;;  %v1744_v40 = vld [vmem:[#allocation4 + $0x258] sm:$0xff]  ;;  %v1735_v43 = vld [vmem:[#allocation4 + $0x210] sm:$0xff] }
  0x2c   :  { %1058 = vmatpush.bf16.msrb.mxu0 %v1708_v39  ;;  %1027 = vmatmul.bf16.vlgmr.msra.gmra.mxu1 %v97_v49  ;;  %v1753_v37 = vld [vmem:[#allocation4 + $0x2a0] sm:$0xff]  ;;  %v1736_v39 = vld [vmem:[#allocation4 + $0x218] sm:$0xff]  ;;  %v1743_v44 = vld [vmem:[#allocation4 + $0x250] sm:$0xff] }
  0x2d   :  { %1071 = vmatpush.bf16.msrb.mxu1 %v1716_v41  ;;  %1040 = vmatmul.bf16.vlgmr.msra.gmra.mxu2 %v98_v47  ;;  %v1761_v38 = vld [vmem:[#allocation4 + $0x2e0] sm:$0xff]  ;;  %v1752_v41 = vld [vmem:[#allocation4 + $0x298] sm:$0xff]  ;;  %v1751_v45 = vld [vmem:[#allocation4 + $0x290] sm:$0xff] }
  0x2e   :  { %1084 = vmatpush.bf16.msrb.mxu2 %v1724_v42  ;;  %1053 = vmatmul.bf16.vlgmr.msra.gmra.mxu3 %v99_v52  ;;  %v1760_v42 = vld [vmem:[#allocation4 + $0x2d8] sm:$0xff]  ;;  %v1734_v47 = vld [vmem:[#allocation4 + $0x208] sm:$0xff]  ;;  %v1741_v52 = vld [vmem:[#allocation4 + $0x240] sm:$0xff] }
  0x2f   :  { %1097 = vmatpush.bf16.msrb.mxu3 %v1732_v46  ;;  %v1759_v46 = vld [vmem:[#allocation4 + $0x2d0] sm:$0xff]  ;;  %v1750_v49 = vld [vmem:[#allocation4 + $0x288] sm:$0xff]  ;;  %v1749_v55 = vld [vmem:[#allocation4 + $0x280] sm:$0xff] }
  0x30   :  { %1059 = vmatpush.bf16.msrb.mxu0 %v1707_v48  ;;  %v1742_v48 = vld [vmem:[#allocation4 + $0x248] sm:$0xff]  ;;  %v1780_v58 = vld [vmem:[#allocation4 + $0x378] sm:$0xff]  ;;  %v1757_v59 = vld [vmem:[#allocation4 + $0x2c0] sm:$0xff] }
  0x31   :  { %1072 = vmatpush.bf16.msrb.mxu1 %v1715_v50  ;;  %v1758_v50 = vld [vmem:[#allocation4 + $0x2c8] sm:$0xff] }
  0x32   :  { %1085 = vmatpush.bf16.msrb.mxu2 %v1723_v51  ;;  %v1733_v51 = vld [vmem:[#allocation4 + $0x200] sm:$0xff]  ;;  %v81_v16 = vld.sshfl [vmem:[#allocation1 + $0x28] sm:$0xff pattern:$0x75316420] }
  0x33   :  { %1098 = vmatpush.bf16.msrb.mxu3 %v1731_v53  ;;  %v76_v53 = vld.sshfl [vmem:[#allocation1] sm:$0xff pattern:$0x75316420] }
  0x34   :  { %1060 = vmatpush.bf16.msrb.mxu0 %v1706_v54  ;;  %v77_v54 = vld.sshfl [vmem:[#allocation1 + $0x8] sm:$0xff pattern:$0x75316420] }
  0x35   :  { %1073 = vmatpush.bf16.msrb.mxu1 %v1714_v56  ;;  %v1772_v56 = vld [vmem:[#allocation4 + $0x338] sm:$0xff] }
  0x36   :  { %1086 = vmatpush.bf16.msrb.mxu2 %v1722_v57  ;;  %v78_v57 = vld.sshfl [vmem:[#allocation1 + $0x10] sm:$0xff pattern:$0x75316420] }
  0x37   :  { %1099 = vmatpush.bf16.msrb.mxu3 %v1730_v60  ;;  %v79_v60 = vld.sshfl [vmem:[#allocation1 + $0x18] sm:$0xff pattern:$0x75316420] }
  0x38   :  { %1061 = vmatpush.bf16.msrb.mxu0 %v1705_v61  ;;  %v104_v61 = vpack.c.bf16 %v76_v53, %v76_v53 }
  0x39   :  { %1074 = vmatpush.bf16.msrb.mxu1 %v1713_v62  ;;  %v105_v62 = vpack.c.bf16 %v77_v54, %v77_v54 }
  0x3a   :  { %1087 = vmatpush.bf16.msrb.mxu2 %v1721_v63  ;;  %v106_v63 = vpack.c.bf16 %v78_v57, %v78_v57  ;;  %v1785_v57 = vld [vmem:[%s1888_s2] ss:$0 sm:$0xff] }
  0x3b   :  { %1100 = vmatpush.bf16.msrb.mxu3 %v1729_v0  ;;  %v107_v0 = vpack.c.bf16 %v79_v60, %v79_v60 }
  0x3c   :  { %1062 = vmatpush.bf16.msrb.mxu0 %v1704_v1  ;;  %v1771_v1 = vld [vmem:[#allocation4 + $0x330] sm:$0xff] }
  0x3d   :  { %1075 = vmatpush.bf16.msrb.mxu1 %v1712_v2  ;;  %v1779_v2 = vld [vmem:[#allocation4 + $0x370] sm:$0xff] }
  0x3e   :  { %1088 = vmatpush.bf16.msrb.mxu2 %v1720_v3  ;;  %v1770_v3 = vld [vmem:[#allocation4 + $0x328] sm:$0xff] }
  0x3f   :  { %1101 = vmatpush.bf16.msrb.mxu3 %v1728_v4  ;;  %v1778_v4 = vld [vmem:[#allocation4 + $0x368] sm:$0xff] }
  0x40   :  { %1063 = vmatpush.bf16.msrb.mxu0 %v1703_v5  ;;  %v1769_v5 = vld [vmem:[#allocation4 + $0x320] sm:$0xff] }
  0x41   :  { %1076 = vmatpush.bf16.msrb.mxu1 %v1711_v6  ;;  %v1777_v6 = vld [vmem:[#allocation4 + $0x360] sm:$0xff] }
  0x42   :  { %1089 = vmatpush.bf16.msrb.mxu2 %v1719_v7  ;;  %v1768_v7 = vld [vmem:[#allocation4 + $0x318] sm:$0xff] }
  0x43   :  { %1102 = vmatpush.bf16.msrb.mxu3 %v1727_v8  ;;  %v1776_v8 = vld [vmem:[#allocation4 + $0x358] sm:$0xff] }
  0x44   :  { %1064 = vmatpush.bf16.msrb.mxu0 %v1702_v9  ;;  %v1767_v9 = vld [vmem:[#allocation4 + $0x310] sm:$0xff] }
  0x45   :  { %1077 = vmatpush.bf16.msrb.mxu1 %v1710_v10  ;;  %v1775_v10 = vld [vmem:[#allocation4 + $0x350] sm:$0xff] }
  0x46   :  { %1090 = vmatpush.bf16.msrb.mxu2 %v1718_v11  ;;  %v1766_v11 = vld [vmem:[#allocation4 + $0x308] sm:$0xff] }
  0x47   :  { %1103 = vmatpush.bf16.msrb.mxu3 %v1726_v12  ;;  %v1774_v12 = vld [vmem:[#allocation4 + $0x348] sm:$0xff] }
  0x48   :  { %1065 = vmatpush.bf16.msrb.mxu0 %v1701_v13  ;;  %v1765_v13 = vld [vmem:[#allocation4 + $0x300] sm:$0xff] }
  0x49   :  { %1078 = vmatpush.bf16.msrb.mxu1 %v1709_v14  ;;  %v80_v14 = vld.sshfl [vmem:[#allocation1 + $0x20] sm:$0xff pattern:$0x75316420] }
  0x4a   :  { %1091 = vmatpush.bf16.msrb.mxu2 %v1717_v15  ;;  %v1773_v15 = vld [vmem:[#allocation4 + $0x340] sm:$0xff] }
  0x4b   :  { %1104 = vmatpush.bf16.msrb.mxu3 %v1725_v20  ;;  %1066 = vmatmul.bf16.vlgmr.msrb.gmra.mxu0 %v100_v24 }
  0x4c   :  { %1110 = vmatpush.bf16.msra.mxu0 %v1740_v17  ;;  %1079 = vmatmul.bf16.vlgmr.msrb.gmra.mxu1 %v101_v25  ;;  %v108_v17 = vpack.c.bf16 %v80_v14, %v80_v14 }
  0x4d   :  { %1123 = vmatpush.bf16.msra.mxu1 %v1748_v18  ;;  %1092 = vmatmul.bf16.vlgmr.msrb.gmra.mxu2 %v102_v22  ;;  %v109_v18 = vpack.c.bf16 %v81_v16, %v81_v16 }
  0x4e   :  { %1136 = vmatpush.bf16.msra.mxu2 %v1756_v19  ;;  %1105 = vmatmul.bf16.vlgmr.msrb.gmra.mxu3 %v103_v29 }
  0x4f   :  { %1149 = vmatpush.bf16.msra.mxu3 %v1764_v21 }
  0x50   :  { %1111 = vmatpush.bf16.msra.mxu0 %v1739_v26 }
  0x51   :  { %1124 = vmatpush.bf16.msra.mxu1 %v1747_v27 }
  0x52   :  { %1137 = vmatpush.bf16.msra.mxu2 %v1755_v28 }
  0x53   :  { %1150 = vmatpush.bf16.msra.mxu3 %v1763_v30 }
  0x54   :  { %1112 = vmatpush.bf16.msra.mxu0 %v1738_v31 }
  0x55   :  { %1125 = vmatpush.bf16.msra.mxu1 %v1746_v32 }
  0x56   :  { %1138 = vmatpush.bf16.msra.mxu2 %v1754_v33 }
  0x57   :  { %1151 = vmatpush.bf16.msra.mxu3 %v1762_v34 }
  0x58   :  { %1113 = vmatpush.bf16.msra.mxu0 %v1737_v35 }
  0x59   :  { %1126 = vmatpush.bf16.msra.mxu1 %v1745_v36 }
  0x5a   :  { %1139 = vmatpush.bf16.msra.mxu2 %v1753_v37 }
  0x5b   :  { %1152 = vmatpush.bf16.msra.mxu3 %v1761_v38 }
  0x5c   :  { %1114 = vmatpush.bf16.msra.mxu0 %v1736_v39 }
  0x5d   :  { %1127 = vmatpush.bf16.msra.mxu1 %v1744_v40 }
  0x5e   :  { %1140 = vmatpush.bf16.msra.mxu2 %v1752_v41 }
  0x5f   :  { %1153 = vmatpush.bf16.msra.mxu3 %v1760_v42 }
  0x60   :  { %1115 = vmatpush.bf16.msra.mxu0 %v1735_v43 }
  0x61   :  { %1128 = vmatpush.bf16.msra.mxu1 %v1743_v44 }
  0x62   :  { %1141 = vmatpush.bf16.msra.mxu2 %v1751_v45 }
  0x63   :  { %1154 = vmatpush.bf16.msra.mxu3 %v1759_v46 }
  0x64   :  { %1116 = vmatpush.bf16.msra.mxu0 %v1734_v47 }
  0x65   :  { %1129 = vmatpush.bf16.msra.mxu1 %v1742_v48 }
  0x66   :  { %1142 = vmatpush.bf16.msra.mxu2 %v1750_v49 }
  0x67   :  { %1155 = vmatpush.bf16.msra.mxu3 %v1758_v50 }
  0x68   :  { %1117 = vmatpush.bf16.msra.mxu0 %v1733_v51 }
  0x69   :  { %1130 = vmatpush.bf16.msra.mxu1 %v1741_v52 }
  0x6a   :  { %1143 = vmatpush.bf16.msra.mxu2 %v1749_v55 }
  0x6b   :  { %1156 = vmatpush.bf16.msra.mxu3 %v1757_v59  ;;  %1118 = vmatmul.bf16.vlgmr.msra.gmra.mxu0 %v104_v61 }
  0x6c   :  { %1162 = vmatpush.bf16.msrb.mxu0 %v1772_v56  ;;  %1131 = vmatmul.bf16.vlgmr.msra.gmra.mxu1 %v105_v62 }
  0x6d   :  { %1175 = vmatpush.bf16.msrb.mxu1 %v1780_v58  ;;  %1144 = vmatmul.bf16.vlgmr.msra.gmra.mxu2 %v106_v63 }
  0x6e   :  { %1157 = vmatmul.bf16.vlgmr.msra.gmra.mxu3 %v107_v0 }
  0x70   :  { %1163 = vmatpush.bf16.msrb.mxu0 %v1771_v1 }
  0x71   :  { %1176 = vmatpush.bf16.msrb.mxu1 %v1779_v2 }
  0x74   :  { %1164 = vmatpush.bf16.msrb.mxu0 %v1770_v3 }
  0x75   :  { %1177 = vmatpush.bf16.msrb.mxu1 %v1778_v4 }
  0x78   :  { %1165 = vmatpush.bf16.msrb.mxu0 %v1769_v5 }
  0x79   :  { %1178 = vmatpush.bf16.msrb.mxu1 %v1777_v6 }
  0x7c   :  { %1166 = vmatpush.bf16.msrb.mxu0 %v1768_v7 }
  0x7d   :  { %1179 = vmatpush.bf16.msrb.mxu1 %v1776_v8 }
  0x80   :  { %1167 = vmatpush.bf16.msrb.mxu0 %v1767_v9 }
  0x81   :  { %1180 = vmatpush.bf16.msrb.mxu1 %v1775_v10 }
  0x84   :  { %1168 = vmatpush.bf16.msrb.mxu0 %v1766_v11 }
  0x85   :  { %1181 = vmatpush.bf16.msrb.mxu1 %v1774_v12 }
  0x88   :  { %1169 = vmatpush.bf16.msrb.mxu0 %v1765_v13 }
  0x89   :  { %1182 = vmatpush.bf16.msrb.mxu1 %v1773_v15 }
  0x8b   :  { %1170 = vmatmul.bf16.vlgmr.msrb.gmra.mxu0 %v108_v17 }
  0x8c   :  { %1183 = vmatmul.bf16.vlgmr.msrb.gmra.mxu1 %v109_v18 }
  0xa8   :  { %v1015_v19 = vpop.f32.mrf.mxu0 }
  0xa9   :  { %v1028_v20 = vpop.f32.mrf.mxu1 }
  0xaa   :  { %v1029_v21 = vadd.f32 %v1028_v20, %v1015_v19 }
  0xb0   :  { %v1041_v22 = vpop.f32.mrf.mxu2  ;;  %v1017_v23 = vpop.f32.mrf.mxu0 }
  0xb1   :  { %v1054_v24 = vpop.f32.mrf.mxu3  ;;  %v1030_v25 = vpop.f32.mrf.mxu1  ;;  %v1042_v36 = vadd.f32 %v1041_v22, %v1029_v21 }
  0xb3   :  { %v1055_v37 = vadd.f32 %v1054_v24, %v1042_v36 }
  0xb8   :  { %v1043_v26 = vpop.f32.mrf.mxu2 }
  0xb9   :  { %v1056_v27 = vpop.f32.mrf.mxu3 }
  0xc8   :  { %v1067_v28 = vpop.f32.mrf.mxu0 }
  0xc9   :  { %v1080_v29 = vpop.f32.mrf.mxu1  ;;  %v1068_v40 = vadd.f32 %v1067_v28, %v1055_v37 }
  0xcb   :  { %v1081_v42 = vadd.f32 %v1080_v29, %v1068_v40 }
  0xd0   :  { %v1093_v30 = vpop.f32.mrf.mxu2  ;;  %v1069_v32 = vpop.f32.mrf.mxu0 }
  0xd1   :  { %v1106_v31 = vpop.f32.mrf.mxu3  ;;  %v1082_v33 = vpop.f32.mrf.mxu1  ;;  %v1094_v46 = vadd.f32 %v1093_v30, %v1081_v42 }
  0xd3   :  { %v1107_v48 = vadd.f32 %v1106_v31, %v1094_v46 }
  0xd8   :  { %v1095_v34 = vpop.f32.mrf.mxu2 }
  0xd9   :  { %v1108_v35 = vpop.f32.mrf.mxu3 }
  0xe8   :  { %v1119_v38 = vpop.f32.mrf.mxu0 }
  0xe9   :  { %v1132_v39 = vpop.f32.mrf.mxu1  ;;  %v1120_v50 = vadd.f32 %v1119_v38, %v1107_v48 }
  0xeb   :  { %v1133_v51 = vadd.f32 %v1132_v39, %v1120_v50 }
  0xf0   :  { %v1145_v41 = vpop.f32.mrf.mxu2  ;;  %v1121_v44 = vpop.f32.mrf.mxu0 }
  0xf1   :  { %v1158_v43 = vpop.f32.mrf.mxu3  ;;  %v1134_v45 = vpop.f32.mrf.mxu1  ;;  %v1146_v52 = vadd.f32 %v1145_v41, %v1133_v51 }
  0xf3   :  { %v1159_v53 = vadd.f32 %v1158_v43, %v1146_v52 }
  0xf8   :  { %v1147_v47 = vpop.f32.mrf.mxu2 }
  0xf9   :  { %v1160_v49 = vpop.f32.mrf.mxu3 }
 0x108   :  { %v1171_v54 = vpop.f32.mrf.mxu0 }
 0x109   :  { %v1172_v55 = vadd.f32 %v1171_v54, %v1159_v53  ;;  %v1184_v56 = vpop.f32.mrf.mxu1 }
 0x10b   :  { %v1185_v58 = vadd.f32 %v1184_v56, %v1172_v55 }
 0x10d   :  { %v1192_v59 = vadd.f32 %v1785_v57, %v1185_v58 }
 0x10f   :  { %v1668_v60 = vmul.f32 -1.442695, %v1192_v59 }
 0x110   :  { %v1173_v61 = vpop.f32.mrf.mxu0 }
 0x111   :  { %1786 = vpow2.f32 %v1668_v60  ;;  %v1186_v62 = vpop.f32.mrf.mxu1 }
 0x117   :  { %v1787_v63 = vpop.eup %1786 }
 0x118   :  { %v1196_v0 = vadd.f32 1.0, %v1787_v63 }
 0x11a   :  { %1788 = vrcp.f32 %v1196_v0  ;;  %v1208_v4 = vand.u32 2147483648, %v1196_v0  ;;  %v1206_v6 = vand.u32 2147483647, %v1196_v0  ;;  %vm1202_vm1 = vweird.f32 %v1196_v0 }
 0x11c   :  { %v1209_v8 = vor.u32 1.1754944e-38, %v1208_v4  ;;  %vm1207_vm4 = vcmp.eq.f32.partialorder %v1206_v6, 8.507059e+37 }
 0x120   :  { %v1789_v1 = vpop.eup %1788 }
 0x121   :  { %v1198_v2 = vmul.f32 %v1789_v1, %v1196_v0  ;;  %vm1203_vm0 = vweird.f32 %v1789_v1 }
 0x122   :  { %vm1204_vm2 = vmor %vm1202_vm1, %vm1203_vm0 }
 0x123   :  { %v1199_v3 = vsub.f32 1.0, %v1198_v2 }
 0x125   :  { %v1200_v5 = vmul.f32 %v1789_v1, %v1199_v3 }
 0x127   :  { %v1201_v7 = vadd.f32 %v1789_v1, %v1200_v5 }
 0x129   :  { %v1205_v9 = vsel %vm1204_vm2, %v1789_v1, %v1201_v7 }
 0x12a   :  { %v1210_v10 = vsel %vm1207_vm4, %v1209_v8, %v1205_v9 }
 0x12b   :  { %1213 = vst.msk [vmem:[%s1889_s3] sm:$0xf] %vm1212_vm3, %v1210_v10 }
 0x12c   :  { %1218 = vsyncpa [#allocation3], 1 }
 0x12d   :  { %1219 = vsyncpa [#allocation5], 1 }

</bundles_post_ra>
